<compile_context>
chip_gen: v7x
topology: tpu7x:2x2x1
jax: 0.10.0
libtpu: 0.0.40
codegen_flags: <defaults>
</compile_context>

<pallas_src>
import jax
import jax.numpy as jnp
from jax.experimental import pallas as pl
from jax.experimental.pallas import tpu as pltpu


def _gating_kernel(x_ref, t_ref, w1a_ref, w1t_ref, b1_ref, w2_ref, b2_ref, o_ref):
    # x_ref  : [TB, D]   bf16   (task features tile)
    # t_ref  : [TB, 1]   f32    (timestep column tile)
    # w1a_ref: [D, H]    bf16,  w1t_ref: [1, H] f32,  b1_ref: [1, H] f32
    # w2_ref : [H, Lp]   bf16,  b2_ref : [1, Lp] f32  (padded cols = -1e30 bias)
    # o_ref  : [TB, Lp]  f32

    # fc1: MXU matmul (bf16 in, f32 accumulate) + rank-1 timestep term (VPU, f32)
    h = jnp.dot(x_ref[...], w1a_ref[...], preferred_element_type=jnp.float32)
    h = h + t_ref[...].astype(jnp.float32) * w1t_ref[...].astype(jnp.float32)
    h = h + b1_ref[...]
    h = jnp.maximum(h, 0.0)

    # fc2: MXU matmul (bf16 in, f32 accumulate) + bias
    logits = jnp.dot(h.astype(w2_ref.dtype), w2_ref[...],
                     preferred_element_type=jnp.float32) + b2_ref[...]

    # numerically-stable softmax along last dim (padded cols have -1e30 bias -> 0)
    m = jnp.max(logits, axis=-1, keepdims=True)
    e = jnp.exp(logits - m)
    denom = jnp.sum(e, axis=-1, keepdims=True)
    o_ref[...] = (e * pl.reciprocal(denom, approx=True)).astype(o_ref.dtype)


def gating_network_forward(task_features, timestep, w1, b1, w2, b2, *, block_b=512):
    """task_features: [B, D] f32, timestep: [B] f32 -> [B, num_loras] f32.

    w1: [D+1, H], b1: [1, H], w2: [H, L], b2: [1, L]  (pre-transposed, [in, out]).
    """
    B, D = task_features.shape
    H = w1.shape[1]
    L = w2.shape[1]

    # Split fc1 weight: matmul part [D, H] + rank-1 timestep row [1, H].
    w1a = w1[:D].astype(jnp.bfloat16)
    w1t = w1[D:D + 1].astype(jnp.float32)
    b1f = b1.astype(jnp.float32)

    # Lane-dense output: pad num_loras to a multiple of 128.
    L_pad = max(128, ((L + 127) // 128) * 128)
    w2p = jnp.zeros((H, L_pad), jnp.bfloat16).at[:, :L].set(w2.astype(jnp.bfloat16))
    b2p = jnp.full((1, L_pad), -1e30, jnp.float32).at[:, :L].set(b2.astype(jnp.float32))

    # Batch tiling: block_b a multiple of 8; pad ragged tail with zero rows.
    block_b = min(block_b, max(8, ((B + 7) // 8) * 8))
    B_pad = ((B + block_b - 1) // block_b) * block_b

    x = task_features.astype(jnp.bfloat16)
    t = timestep.astype(jnp.float32)[:, None]
    if B_pad != B:
        x = jnp.pad(x, ((0, B_pad - B), (0, 0)))
        t = jnp.pad(t, ((0, B_pad - B), (0, 0)))

    grid = (B_pad // block_b,)

    out = pl.pallas_call(
        _gating_kernel,
        out_shape=jax.ShapeDtypeStruct((B_pad, L_pad), jnp.float32),
        grid=grid,
        in_specs=[
            pl.BlockSpec((block_b, D), lambda i: (i, 0)),   # task features (streamed)
            pl.BlockSpec((block_b, 1), lambda i: (i, 0)),   # timestep column (streamed)
            pl.BlockSpec((D, H), lambda i: (0, 0)),         # W1a (resident)
            pl.BlockSpec((1, H), lambda i: (0, 0)),         # w1_t (resident)
            pl.BlockSpec((1, H), lambda i: (0, 0)),         # b1 (resident)
            pl.BlockSpec((H, L_pad), lambda i: (0, 0)),     # W2 padded (resident)
            pl.BlockSpec((1, L_pad), lambda i: (0, 0)),     # b2 padded (resident)
        ],
        out_specs=pl.BlockSpec((block_b, L_pad), lambda i: (i, 0)),
        compiler_params=pltpu.CompilerParams(
            dimension_semantics=("parallel",)),
    )(x, t, w1a, w1t, b1f, w2p, b2p)

    return out[:B, :L]


def init_params(key, input_dim, num_loras, timestep_dim=1, hidden=128):
    """Deterministic nn.Linear-style init (uniform +/- 1/sqrt(fan_in))."""
    k1, k2, k3, k4 = jax.random.split(key, 4)
    fan1 = input_dim + timestep_dim
    bound1 = 1.0 / jnp.sqrt(fan1)
    bound2 = 1.0 / jnp.sqrt(hidden)
    # stored as [in, out] (pre-transposed w.r.t. PyTorch's [out, in])
    w1 = jax.random.uniform(k1, (fan1, hidden), jnp.float32, -bound1, bound1)
    b1 = jax.random.uniform(k2, (1, hidden), jnp.float32, -bound1, bound1)
    w2 = jax.random.uniform(k3, (hidden, num_loras), jnp.float32, -bound2, bound2)
    b2 = jax.random.uniform(k4, (1, num_loras), jnp.float32, -bound2, bound2)
    return w1, b1, w2, b2


if __name__ == "__main__":
    key = jax.random.PRNGKey(0)
    k_feat, k_time, k_param = jax.random.split(key, 3)

    batch = 8
    input_dim = 32
    num_loras = 8
    timestep_dim = 1

    task_features = jax.random.normal(k_feat, (batch, input_dim), jnp.float32)
    timestep = jax.random.uniform(k_time, (batch,), jnp.float32)

    w1, b1, w2, b2 = init_params(k_param, input_dim, num_loras, timestep_dim)

    out = gating_network_forward(task_features, timestep, w1, b1, w2, b2)
    out = jax.block_until_ready(out)

    # sanity checks vs. pure-JAX f32 reference (bf16 matmul operands => loose atol)
    x = jnp.concatenate([task_features, timestep[:, None]], axis=-1)
    ref = jax.nn.softmax(jnp.maximum(x @ w1 + b1, 0.0) @ w2 + b2, axis=-1)
    assert out.shape == (batch, num_loras)
    assert bool(jnp.all(jnp.isfinite(out)))
    assert jnp.allclose(jnp.sum(out, axis=-1), 1.0, atol=5e-3)
    assert jnp.allclose(out, ref, atol=2e-2)

    print("KERNEL_OK")
</pallas_src>

<mosaic_0001>
module attributes {stable_mosaic.version = 11 : i64} {
  func.func @_gating_kernel(%arg0: i32, %arg1: memref<8x32xbf16, #tpu.memory_space<vmem>>, %arg2: memref<8x1xf32, #tpu.memory_space<vmem>>, %arg3: memref<32x128xbf16, #tpu.memory_space<vmem>>, %arg4: memref<1x128xf32, #tpu.memory_space<vmem>>, %arg5: memref<1x128xf32, #tpu.memory_space<vmem>>, %arg6: memref<128x128xbf16, #tpu.memory_space<vmem>>, %arg7: memref<1x128xf32, #tpu.memory_space<vmem>>, %arg8: memref<8x128xf32, #tpu.memory_space<vmem>>) attributes {dimension_semantics = [#tpu.dimension_semantics<parallel>], iteration_bounds = array<i64: 1>, scalar_prefetch = 0 : i64, scratch_operands = 0 : i64, tpu.core_type = #tpu.core_type<tc>, window_params = [{transform_indices = @transform_0, window_bounds = array<i64: 8, 32>}, {transform_indices = @transform_1, window_bounds = array<i64: 8, 1>}, {pipeline_mode = #tpu.pipeline_mode<synchronous>, transform_indices = @transform_2, window_bounds = array<i64: 32, 128>}, {pipeline_mode = #tpu.pipeline_mode<synchronous>, transform_indices = @transform_3, window_bounds = array<i64: 1, 128>}, {pipeline_mode = #tpu.pipeline_mode<synchronous>, transform_indices = @transform_4, window_bounds = array<i64: 1, 128>}, {pipeline_mode = #tpu.pipeline_mode<synchronous>, transform_indices = @transform_5, window_bounds = array<i64: 128, 128>}, {pipeline_mode = #tpu.pipeline_mode<synchronous>, transform_indices = @transform_6, window_bounds = array<i64: 1, 128>}, {transform_indices = @transform_7, window_bounds = array<i64: 8, 128>}]} {
    %c0 = arith.constant 0 : index
    %c0_0 = arith.constant 0 : index
    %0 = vector.load %arg1[%c0, %c0_0] : memref<8x32xbf16, #tpu.memory_space<vmem>>, vector<8x32xbf16>
    %c0_1 = arith.constant 0 : index
    %c0_2 = arith.constant 0 : index
    %1 = vector.load %arg3[%c0_1, %c0_2] : memref<32x128xbf16, #tpu.memory_space<vmem>>, vector<32x128xbf16>
    %cst = arith.constant dense<0.000000e+00> : vector<8x128xf32>
    %2 = tpu.matmul %0, %1, %cst {dimension_numbers = #tpu.dot_dimension_numbers<[1], [0], [0], [1], [0, 0, 1, 1], [], []>} : vector<8x32xbf16>, vector<32x128xbf16>, vector<8x128xf32> -> vector<8x128xf32>
    %c0_3 = arith.constant 0 : index
    %c0_4 = arith.constant 0 : index
    %3 = vector.load %arg2[%c0_3, %c0_4] : memref<8x1xf32, #tpu.memory_space<vmem>>, vector<8x1xf32>
    %c0_5 = arith.constant 0 : index
    %c0_6 = arith.constant 0 : index
    %4 = vector.load %arg4[%c0_5, %c0_6] : memref<1x128xf32, #tpu.memory_space<vmem>>, vector<1x128xf32>
    %5 = vector.broadcast %3 : vector<8x1xf32> to vector<8x128xf32>
    %6 = vector.broadcast %4 : vector<1x128xf32> to vector<8x128xf32>
    %7 = arith.mulf %5, %6 : vector<8x128xf32>
    %8 = arith.addf %2, %7 : vector<8x128xf32>
    %c0_7 = arith.constant 0 : index
    %c0_8 = arith.constant 0 : index
    %9 = vector.load %arg5[%c0_7, %c0_8] : memref<1x128xf32, #tpu.memory_space<vmem>>, vector<1x128xf32>
    %10 = vector.broadcast %9 : vector<1x128xf32> to vector<8x128xf32>
    %11 = arith.addf %8, %10 : vector<8x128xf32>
    %cst_9 = arith.constant 0.000000e+00 : f32
    %12 = vector.broadcast %cst_9 : f32 to vector<8x128xf32>
    %13 = arith.maximumf %11, %12 : vector<8x128xf32>
    %14 = arith.truncf %13 : vector<8x128xf32> to vector<8x128xbf16>
    %c0_10 = arith.constant 0 : index
    %c0_11 = arith.constant 0 : index
    %15 = vector.load %arg6[%c0_10, %c0_11] : memref<128x128xbf16, #tpu.memory_space<vmem>>, vector<128x128xbf16>
    %cst_12 = arith.constant dense<0.000000e+00> : vector<8x128xf32>
    %16 = tpu.matmul %14, %15, %cst_12 {dimension_numbers = #tpu.dot_dimension_numbers<[1], [0], [0], [1], [0, 0, 1, 1], [], []>} : vector<8x128xbf16>, vector<128x128xbf16>, vector<8x128xf32> -> vector<8x128xf32>
    %c0_13 = arith.constant 0 : index
    %c0_14 = arith.constant 0 : index
    %17 = vector.load %arg7[%c0_13, %c0_14] : memref<1x128xf32, #tpu.memory_space<vmem>>, vector<1x128xf32>
    %18 = vector.broadcast %17 : vector<1x128xf32> to vector<8x128xf32>
    %19 = arith.addf %16, %18 : vector<8x128xf32>
    %cst_15 = arith.constant dense<0xFF800000> : vector<8xf32>
    %20 = vector.multi_reduction <maximumf>, %19, %cst_15 [1] : vector<8x128xf32> to vector<8xf32>
    %21 = vector.shape_cast %20 : vector<8xf32> to vector<8x1xf32>
    %22 = vector.broadcast %21 : vector<8x1xf32> to vector<8x128xf32>
    %23 = arith.subf %19, %22 : vector<8x128xf32>
    %24 = math.exp %23 : vector<8x128xf32>
    %cst_16 = arith.constant dense<0.000000e+00> : vector<8xf32>
    %25 = vector.multi_reduction <add>, %24, %cst_16 [1] : vector<8x128xf32> to vector<8xf32>
    %26 = vector.shape_cast %25 : vector<8xf32> to vector<8x1xf32>
    %27 = tpu.reciprocal %26 {approx = true} : vector<8x1xf32> -> vector<8x1xf32>
    %28 = vector.broadcast %27 : vector<8x1xf32> to vector<8x128xf32>
    %29 = arith.mulf %24, %28 : vector<8x128xf32>
    %c0_17 = arith.constant 0 : index
    %c0_18 = arith.constant 0 : index
    %30 = vector.load %arg8[%c0_17, %c0_18] : memref<8x128xf32, #tpu.memory_space<vmem>>, vector<8x128xf32>
    tpu.vector_store %arg8[%c0_17, %c0_18], %29 {strides = array<i32>} : memref<8x128xf32, #tpu.memory_space<vmem>>, vector<8x128xf32>,
    return
  }
  func.func @transform_0(%arg0: i32) -> (i32, i32) {
    %c0_i32 = arith.constant 0 : i32
    %c0_i32_0 = arith.constant 0 : i32
    return %arg0, %c0_i32 : i32, i32
  }
  func.func @transform_1(%arg0: i32) -> (i32, i32) {
    %c0_i32 = arith.constant 0 : i32
    %c0_i32_0 = arith.constant 0 : i32
    return %arg0, %c0_i32 : i32, i32
  }
  func.func @transform_2(%arg0: i32) -> (i32, i32) {
    %c0_i32 = arith.constant 0 : i32
    %c0_i32_0 = arith.constant 0 : i32
    %c0_i32_1 = arith.constant 0 : i32
    return %c0_i32, %c0_i32_0 : i32, i32
  }
  func.func @transform_3(%arg0: i32) -> (i32, i32) {
    %c0_i32 = arith.constant 0 : i32
    %c0_i32_0 = arith.constant 0 : i32
    %c0_i32_1 = arith.constant 0 : i32
    return %c0_i32, %c0_i32_0 : i32, i32
  }
  func.func @transform_4(%arg0: i32) -> (i32, i32) {
    %c0_i32 = arith.constant 0 : i32
    %c0_i32_0 = arith.constant 0 : i32
    %c0_i32_1 = arith.constant 0 : i32
    return %c0_i32, %c0_i32_0 : i32, i32
  }
  func.func @transform_5(%arg0: i32) -> (i32, i32) {
    %c0_i32 = arith.constant 0 : i32
    %c0_i32_0 = arith.constant 0 : i32
    %c0_i32_1 = arith.constant 0 : i32
    return %c0_i32, %c0_i32_0 : i32, i32
  }
  func.func @transform_6(%arg0: i32) -> (i32, i32) {
    %c0_i32 = arith.constant 0 : i32
    %c0_i32_0 = arith.constant 0 : i32
    %c0_i32_1 = arith.constant 0 : i32
    return %c0_i32, %c0_i32_0 : i32, i32
  }
  func.func @transform_7(%arg0: i32) -> (i32, i32) {
    %c0_i32 = arith.constant 0 : i32
    %c0_i32_0 = arith.constant 0 : i32
    return %arg0, %c0_i32 : i32, i32
  }
}

</mosaic_0001>

<bundles_post_ra>
// kernel: tpu_custom_call.1
= control target key start
LH: loop header
LB: loop body
LE: loop exit
PB: predicated region body
PF: predicated region fallthrough
CT: control target
= control target key end

     0   :  { %12 = vsyncpa [#allocation3], 0  ;;  %s534_s0 = inlined_call_operand.hbm [shape: bf16[8,32], index: 0, kind: input, shape index: {}]   ;;  %s535_s1 = inlined_call_operand.vmem [shape: f32[8,1], index: 1, kind: input, shape index: {}]   ;;  %s536_s2 = inlined_call_operand.vmem [shape: bf16[32,128], index: 2, kind: input, shape index: {}]   ;;  %s537_s3 = inlined_call_operand.vmem [shape: f32[1,128], index: 3, kind: input, shape index: {}]   ;;  %s538_s4 = inlined_call_operand.vmem [shape: f32[1,128], index: 4, kind: input, shape index: {}]   ;;  %s539_s5 = inlined_call_operand.hbm [shape: bf16[128,128], index: 5, kind: input, shape index: {}]   ;;  %s540_s6 = inlined_call_operand.vmem [shape: f32[1,128], index: 6, kind: input, shape index: {}]   ;;  %s541_s7 = inlined_call_operand.hbm [shape: f32[8,128], index: 7, kind: output, shape index: {}]  }
   0x1   :  { %13 = vsyncpa [#allocation6], 0 }
   0x2   :  { %14 = vsyncpa [#allocation4], 0  ;;  %s425_s24 = smov [#allocation2]   ;;  %s426_s26 = smov [#allocation5]  }
   0x3   :  { %s21_s25 = sshll.u32 %s425_s24, 4  ;;  %s38_s27 = sshll.u32 %s426_s26, 4  ;;  %s22_s25 = int_to_ptr.vmem [resolvable:$true] %s21_s25  ;;  %s473_s27 = int_to_ptr.vmem [resolvable:$true] %s38_s27 }
   0x4   :  { %s353_s30 = scalar_lea.hbm %s534_s0, 64 }
   0x5   :  { %p354_p0 = scmp.ne.s32.totalorder %s534_s0, %s353_s30  ;;  %p357_p1 = scmp.lt.u32.totalorder %s353_s30, %s534_s0 }
   0x7   :  { %p359_p2 = pnand %p357_p1, %p354_p0 }
   0x9   :  { %362 = shalt.err (!%p359_p2)
}
   0xa   :  { %s363_s12 = scalar_lea.vmem %s22_s25, 64  ;;  %p368_p4 = scmp.lt.s32.totalorder %s22_s25, %s22_s25 }
   0xb   :  { %p364_p3 = scmp.ne.s32.totalorder %s22_s25, %s363_s12  ;;  %p369_p5 = scmp.lt.s32.totalorder %s363_s12, %s363_s12 }
   0xd   :  { %p370_p6 = por %p369_p5, %p368_p4 }
   0xf   :  { %p371_p7 = pnand %p370_p6, %p364_p3 }
  0x11   :  { %374 = shalt.err (!%p371_p7)
}
  0x12   :  { %24 = dma.hbm_to_vmem [thread:$0]  %s534_s0, 64, %s22_s25, [#allocation3]  }
  0x13   :  { %s375_s17 = scalar_lea.hbm %s539_s5, 1024 }
  0x14   :  { %p376_p8 = scmp.ne.s32.totalorder %s539_s5, %s375_s17  ;;  %p379_p9 = scmp.lt.u32.totalorder %s375_s17, %s539_s5 }
  0x16   :  { %p381_p10 = pnand %p379_p9, %p376_p8 }
  0x18   :  { %384 = shalt.err (!%p381_p10)
}
  0x19   :  { %s385_s22 = scalar_lea.vmem %s473_s27, 1024  ;;  %p390_p12 = scmp.lt.s32.totalorder %s473_s27, %s473_s27 }
  0x1a   :  { %p386_p11 = scmp.ne.s32.totalorder %s473_s27, %s385_s22  ;;  %p391_p13 = scmp.lt.s32.totalorder %s385_s22, %s385_s22 }
  0x1c   :  { %p392_p0 = por %p391_p13, %p390_p12 }
  0x1e   :  { %p393_p1 = pnand %p392_p0, %p386_p11 }
  0x20   :  { %396 = shalt.err (!%p393_p1)
}
  0x21   :  { %s427_s0 = smov 64   ;;  %s428_s23 = smov 4  }
  0x22   :  { %44 = dma.hbm_to_vmem [thread:$0]  %s539_s5, 1024, %s473_s27, [#allocation6], %s427_s0, %s427_s0, %s428_s23  }
  0x23   :  { %419 = dma.done.wait [#allocation3], 64  }
  0x24   :  { %420 = vsyncadd [#allocation3], 4294967232 }
  0x25   :  { %421 = dma.done.wait [#allocation6], 1024  }
  0x26   :  { %422 = vsyncadd [#allocation6], 4294966272  ;;  %v429_v0 = vmov 0.0   ;;  %vm430_vm0 = vmmov 0   ;;  %v431_v1 = vmov 0   ;;  %v339_v2 = vld [vmem:[%s536_s2] sm:$0xff]  }
  0x27   :  { %302 = vmatprep.subr.bf16.mxu0 %v429_v0  ;;  %306 = vmatprep.mubr.msk.bf16.mxu0 %vm430_vm0, %v429_v0  ;;  %v340_v3 = vld [vmem:[%s536_s2 + $0x8] sm:$0xff]   ;;  %v59_v4 = vld [vmem:[%s535_s1] sm:$0xff]  ;;  %vm85_vm1 = vcmask 261120   ;;  %v343_v8 = vld [vmem:[#allocation5 + $0x10] sm:$0xff]  }
  0x28   :  { %338 = vset.pattern.permute.xlu0 %v431_v1  ;;  %310 = vmatprep.subr.bf16.mxu1 %v429_v0  ;;  %v341_v5 = vld [vmem:[#allocation5] sm:$0xff]   ;;  %v342_v6 = vld [vmem:[#allocation5 + $0x8] sm:$0xff]   ;;  %v54_v7 = vld [vmem:[#allocation2] sm:$0xf] }
  0x29   :  { %326 = vmatprep.mubr.msk.bf16.mxu1 %vm430_vm0, %v429_v0  ;;  %303 = vmatpush3.bf16.msra.mxu0 %v339_v2  ;;  %v344_v9 = vld [vmem:[#allocation5 + $0x18] sm:$0xff]   ;;  %v345_v10 = vld [vmem:[#allocation5 + $0x20] sm:$0xff]   ;;  %v346_v11 = vld [vmem:[#allocation5 + $0x28] sm:$0xff]  }
  0x2a   :  { %304 = vmatprep.subr.bf16.mxu0 %v429_v0  ;;  %63 = vperm.xlu0 %338, %v59_v4   ;;  %v347_v12 = vld [vmem:[#allocation5 + $0x30] sm:$0xff]   ;;  %v348_v13 = vld [vmem:[#allocation5 + $0x38] sm:$0xff]  }
  0x2b   :  { %311 = vmatpush3.bf16.msra.mxu1 %v341_v5  ;;  %v276_v14 = vld [vmem:[%s537_s3] ss:$0 sm:$0xff]  ;;  %s432_s3 = smov [#allocation7]  }
  0x2c   :  { %312 = vmatprep.subr.bf16.mxu1 %v429_v0  ;;  %v280_v18 = vld [vmem:[%s538_s4] ss:$0 sm:$0xff]  ;;  %s266_s4 = sshll.u32 %s432_s3, 4  ;;  %s267_s4 = int_to_ptr.vmem [resolvable:$true] %s266_s4 }
  0x2d   :  { %305 = vmatpush3.bf16.msra.mxu0 %v340_v3  ;;  %v281_v26 = vld [vmem:[%s540_s6] ss:$0 sm:$0xff]  ;;  %s397_s6 = scalar_lea.vmem %s267_s4, 128  ;;  %p402_p3 = scmp.lt.s32.totalorder %s267_s4, %s267_s4 }
  0x2e   :  { %p398_p2 = scmp.ne.s32.totalorder %s267_s4, %s397_s6  ;;  %p403_p4 = scmp.lt.s32.totalorder %s397_s6, %s397_s6 }
  0x2f   :  { %313 = vmatpush3.bf16.msra.mxu1 %v342_v6 }
  0x30   :  { %307 = vmatmul.mubr.msk.bf16.vlgmr.msra.gmra.mrb[0].mxu0 %vm85_vm1, %v54_v7  ;;  %314 = vmatprep.subr.bf16.mxu1 %v429_v0  ;;  %p404_p5 = por %p403_p4, %p402_p3 }
  0x32   :  { %p405_p6 = pnand %p404_p5, %p398_p2 }
  0x33   :  { %315 = vmatpush3.bf16.msra.mxu1 %v343_v8 }
  0x34   :  { %316 = vmatprep.subr.bf16.mxu1 %v429_v0 }
  0x37   :  { %317 = vmatpush3.bf16.msra.mxu1 %v344_v9 }
  0x38   :  { %318 = vmatprep.subr.bf16.mxu1 %v429_v0 }
  0x3b   :  { %319 = vmatpush3.bf16.msra.mxu1 %v345_v10 }
  0x3c   :  { %320 = vmatprep.subr.bf16.mxu1 %v429_v0 }
  0x3f   :  { %321 = vmatpush3.bf16.msra.mxu1 %v346_v11 }
  0x40   :  { %322 = vmatprep.subr.bf16.mxu1 %v429_v0 }
  0x43   :  { %323 = vmatpush3.bf16.msra.mxu1 %v347_v12 }
  0x44   :  { %324 = vmatprep.subr.bf16.mxu1 %v429_v0 }
  0x47   :  { %325 = vmatpush3.bf16.msra.mxu1 %v348_v13 }
  0xa9   :  { %v64_v15 = vpop.permute.xlu0 %63 }
  0xaa   :  { %v72_v16 = vmul.f32 %v276_v14, %v64_v15 }
 0x103   :  { %v123_v17 = vpop.f32.mrb[0].mxu0 }
 0x104   :  { %v124_v19 = vadd.f32 %v123_v17, %v72_v16  ;;  %v308_v20 = vpop.f32.mrb[1].mxu0 }
 0x105   :  { %v126_v21 = vpop.f32.mrb[2].mxu0 }
 0x106   :  { %v136_v22 = vadd.f32 %v280_v18, %v124_v19  ;;  %v309_v23 = vpop.f32.mrb[3].mxu0 }
 0x108   :  { %v137_v24 = vmax.f32 %v136_v22, 0.0 }
 0x10a   :  { %v138_v25 = vpack.c.bf16 %v137_v24, %v137_v24 }
 0x10c   :  { %327 = vmatmul.mubr.bf16.vlgmr.msra.gmra.mrb[0].mxu1 %v138_v25 }
 0x1df   :  { %v244_v27 = vpop.f32.mrb[0].mxu1 }
 0x1e0   :  { %v245_v28 = vadd.f32 %v281_v26, %v244_v27  ;;  %v328_v29 = vpop.f32.mrb[1].mxu1 }
 0x1e1   :  { %v247_v30 = vpop.f32.mrb[2].mxu1 }
 0x1e2   :  { %250 = vmax.xlane.f32.xlu0 %v245_v28  ;;  %v329_v31 = vpop.f32.mrb[3].mxu1 }
 0x26f   :  { %v251_v32 = vpop.xlane.xlu0 %250 }
 0x270   :  { %v252_v33 = vsub.f32 %v245_v28, %v251_v32 }
 0x272   :  { %v253_v34 = vmul.f32 1.442695, %v252_v33 }
 0x274   :  { %349 = vpow2.f32 %v253_v34 }
 0x27e   :  { %v350_v35 = vpop.eup %349 }
 0x27f   :  { %255 = vadd.xlane.f32.xlu1 %v350_v35 }
 0x30c   :  { %v256_v36 = vpop.xlane.xlu1 %255 }
 0x30d   :  { %351 = vrcp.f32 %v256_v36 }
 0x317   :  { %v352_v37 = vpop.eup %351 }
 0x318   :  { %v258_v38 = vmul.f32 %v352_v37, %v350_v35 }
 0x31a   :  { %259 = vst [vmem:[#allocation7] sm:$0xff] %v258_v38 }
 0x31b   :  { %408 = shalt.err (!%p405_p6)
}
 0x31c   :  { %s409_s14 = scalar_lea.hbm %s541_s7, 128 }
 0x31d   :  { %p410_p7 = scmp.ne.s32.totalorder %s541_s7, %s409_s14  ;;  %p413_p8 = scmp.lt.u32.totalorder %s409_s14, %s541_s7 }
 0x31f   :  { %p415_p9 = pnand %p413_p8, %p410_p7 }
 0x321   :  { %418 = shalt.err (!%p415_p9)
}
 0x322   :  { %269 = dma.vmem_to_hbm [thread:$0]  %s267_s4, 128, %s541_s7, [#allocation4]  }
 0x323   :  { %423 = dma.done.wait [#allocation4], 128  }
 0x324   :  { %424 = vsyncadd [#allocation4], 4294967168 }
 0x325   :  { %273 = vsyncpa [#allocation3], 1 }
 0x326   :  { %274 = vsyncpa [#allocation6], 1 }
 0x327   :  { %275 = vsyncpa [#allocation4], 1 }

</bundles_post_ra>
